<compile_context>
chip_gen: v7x
topology: tpu7x:2x2x1
jax: 0.10.0
libtpu: 0.0.40
codegen_flags: <defaults>
</compile_context>

<pallas_src>
import functools

import jax
import jax.numpy as jnp
from jax.experimental import pallas as pl
from jax.experimental.pallas import tpu as pltpu

ALPHA = 0.25
GAMMA = 2.0

LANES = 1024          # wide, lane-dense last dim (multiple of 128)
SUBLANES = 8
MAX_BLOCK_ROWS = 1024  # 1024 x 1024 x f32 = 4 MiB per buffer per pipeline stage


def _round_up(x, m):
    return ((x + m - 1) // m) * m


def _focal_loss_kernel(pred_ref, target_ref, out_ref, *, alpha, gamma):
    x = pred_ref[...].astype(jnp.float32)
    t = target_ref[...].astype(jnp.float32)

    # Share exp(-|x|) between sigmoid and the numerically stable BCE-with-logits.
    #   e = exp(-|x|) in (0, 1]  -> no overflow for any x.
    #   sigmoid(x) = 1/(1+e)          if x >= 0
    #              = e/(1+e)          if x <  0
    #   bce(x, t)  = max(x, 0) - x*t + log(1 + e)
    e = jnp.exp(-jnp.abs(x))
    p = jnp.where(x >= 0.0, 1.0, e) / (1.0 + e)
    ce = jnp.maximum(x, 0.0) - x * t + jnp.log1p(e)

    p_t = p * t + (1.0 - p) * (1.0 - t)
    m = 1.0 - p_t
    g = float(gamma)
    if g == 2.0:          # default: one VALU multiply instead of exp/log pair
        mod = m * m
    elif g == 1.0:
        mod = m
    elif g == 0.0:
        mod = jnp.ones_like(m)
    else:                 # non-integer gamma keeps torchvision semantics
        mod = jnp.power(m, g)
    loss = ce * mod

    # alpha weighting (torchvision applies it when alpha >= 0)
    if alpha >= 0:
        alpha_t = alpha * t + (1.0 - alpha) * (1.0 - t)
        loss = alpha_t * loss

    out_ref[...] = loss.astype(out_ref.dtype)


def sigmoid_focal_loss_pallas(pred, target, alpha=ALPHA, gamma=GAMMA):
    """Elementwise sigmoid focal loss, reduction='none'. pred/target: (N, C, H, W)."""
    assert pred.shape == target.shape
    orig_shape = pred.shape
    orig_dtype = pred.dtype
    itemsize = jnp.dtype(orig_dtype).itemsize

    total = 1
    for d in orig_shape:
        total *= d

    # Choose the block so that:
    #   - big inputs use 4 MiB/buffer blocks (24 MiB total for 6 pipeline buffers),
    #   - mid-size inputs still get >= 2 grid steps (megacore sharding on v7x),
    #   - the row count stays a sublane (8) multiple.
    rows_needed = -(-total // LANES)
    if rows_needed <= MAX_BLOCK_ROWS:
        if rows_needed >= 2 * SUBLANES:
            block_rows = _round_up(-(-rows_needed // 2), SUBLANES)
        else:
            block_rows = _round_up(rows_needed, SUBLANES)
    else:
        block_rows = MAX_BLOCK_ROWS
    rows_padded = _round_up(rows_needed, block_rows)
    padded_total = rows_padded * LANES
    pad = padded_total - total

    # Single pad per input (zero fill is safe for every op in the kernel), then
    # reshape to a lane-dense (rows_padded, LANES) slab.
    pred2d = jnp.pad(pred.reshape(-1), (0, pad)).reshape(rows_padded, LANES)
    target2d = jnp.pad(target.reshape(-1), (0, pad)).reshape(rows_padded, LANES)

    grid = (rows_padded // block_rows,)
    kernel = functools.partial(_focal_loss_kernel, alpha=alpha, gamma=gamma)

    cost = pl.CostEstimate(
        flops=12 * padded_total,
        transcendentals=2 * padded_total,
        bytes_accessed=3 * padded_total * itemsize,
    )

    out2d = pl.pallas_call(
        kernel,
        out_shape=jax.ShapeDtypeStruct((rows_padded, LANES), orig_dtype),
        grid_spec=pltpu.PrefetchScalarGridSpec(
            num_scalar_prefetch=0,
            grid=grid,
            in_specs=[
                pl.BlockSpec((block_rows, LANES), lambda i: (i, 0)),
                pl.BlockSpec((block_rows, LANES), lambda i: (i, 0)),
            ],
            out_specs=pl.BlockSpec((block_rows, LANES), lambda i: (i, 0)),
        ),
        compiler_params=pltpu.CompilerParams(
            dimension_semantics=("parallel",),
            # 6 pipeline buffers x 4 MiB = 24 MiB; 48 MiB leaves headroom on
            # v7x (64 MiB physical) and lifts the v5e 16 MiB scoped default.
            vmem_limit_bytes=48 * 1024 * 1024,
        ),
        cost_estimate=cost,
    )(pred2d, target2d)

    return out2d.reshape(-1)[:total].reshape(orig_shape)


def _reference_focal_loss(pred, target, alpha=ALPHA, gamma=GAMMA):
    x = pred.astype(jnp.float32)
    t = target.astype(jnp.float32)
    p = jax.nn.sigmoid(x)
    ce = jnp.maximum(x, 0.0) - x * t + jnp.log1p(jnp.exp(-jnp.abs(x)))
    p_t = p * t + (1.0 - p) * (1.0 - t)
    loss = ce * (1.0 - p_t) ** gamma
    if alpha >= 0:
        loss = (alpha * t + (1.0 - alpha) * (1.0 - t)) * loss
    return loss.astype(pred.dtype)


if __name__ == "__main__":
    key = jax.random.PRNGKey(0)
    k1, k2 = jax.random.split(key)

    # Small NCHW-style logits and binary targets (FocalLoss has no learned params).
    N, C, H, W = 2, 4, 16, 16
    pred = jax.random.normal(k1, (N, C, H, W), dtype=jnp.float32) * 2.0
    target = (jax.random.uniform(k2, (N, C, H, W)) > 0.5).astype(jnp.float32)

    out = sigmoid_focal_loss_pallas(pred, target)
    out = jax.block_until_ready(out)

    ref = _reference_focal_loss(pred, target)
    assert out.shape == pred.shape
    assert jnp.allclose(out, ref, atol=1e-5, rtol=1e-5), "mismatch vs reference"

    print("KERNEL_OK")
</pallas_src>

<mosaic_0001>
module attributes {stable_mosaic.version = 11 : i64} {
  func.func @_focal_loss_kernel(%arg0: i32, %arg1: memref<8x1024xf32, #tpu.memory_space<vmem>>, %arg2: memref<8x1024xf32, #tpu.memory_space<vmem>>, %arg3: memref<8x1024xf32, #tpu.memory_space<vmem>>) attributes {dimension_semantics = [#tpu.dimension_semantics<parallel>], iteration_bounds = array<i64: 1>, scalar_prefetch = 0 : i64, scratch_operands = 0 : i64, tpu.core_type = #tpu.core_type<tc>, window_params = [{transform_indices = @transform_0, window_bounds = array<i64: 8, 1024>}, {transform_indices = @transform_1, window_bounds = array<i64: 8, 1024>}, {transform_indices = @transform_2, window_bounds = array<i64: 8, 1024>}]} {
    %c0 = arith.constant 0 : index
    %c0_0 = arith.constant 0 : index
    %0 = vector.load %arg1[%c0, %c0_0] : memref<8x1024xf32, #tpu.memory_space<vmem>>, vector<8x1024xf32>
    %c0_1 = arith.constant 0 : index
    %c0_2 = arith.constant 0 : index
    %1 = vector.load %arg2[%c0_1, %c0_2] : memref<8x1024xf32, #tpu.memory_space<vmem>>, vector<8x1024xf32>
    %2 = math.absf %0 : vector<8x1024xf32>
    %cst = arith.constant 0.000000e+00 : f32
    %3 = vector.broadcast %cst : f32 to vector<8x1024xf32>
    %4 = arith.subf %3, %2 : vector<8x1024xf32>
    %5 = math.exp %4 : vector<8x1024xf32>
    %cst_3 = arith.constant 0.000000e+00 : f32
    %6 = vector.broadcast %cst_3 : f32 to vector<8x1024xf32>
    %7 = arith.cmpf oge, %0, %6 : vector<8x1024xf32>
    %cst_4 = arith.constant 1.000000e+00 : f32
    %8 = vector.broadcast %cst_4 : f32 to vector<8x1024xf32>
    %9 = arith.select %7, %8, %5 : vector<8x1024xi1>, vector<8x1024xf32>
    %cst_5 = arith.constant 1.000000e+00 : f32
    %10 = vector.broadcast %cst_5 : f32 to vector<8x1024xf32>
    %11 = arith.addf %10, %5 : vector<8x1024xf32>
    %12 = arith.divf %9, %11 : vector<8x1024xf32>
    %cst_6 = arith.constant 0.000000e+00 : f32
    %13 = vector.broadcast %cst_6 : f32 to vector<8x1024xf32>
    %14 = arith.maximumf %0, %13 : vector<8x1024xf32>
    %15 = arith.mulf %0, %1 : vector<8x1024xf32>
    %16 = arith.subf %14, %15 : vector<8x1024xf32>
    %17 = math.log1p %5 : vector<8x1024xf32>
    %18 = arith.addf %16, %17 : vector<8x1024xf32>
    %19 = arith.mulf %12, %1 : vector<8x1024xf32>
    %cst_7 = arith.constant 1.000000e+00 : f32
    %20 = vector.broadcast %cst_7 : f32 to vector<8x1024xf32>
    %21 = arith.subf %20, %12 : vector<8x1024xf32>
    %cst_8 = arith.constant 1.000000e+00 : f32
    %22 = vector.broadcast %cst_8 : f32 to vector<8x1024xf32>
    %23 = arith.subf %22, %1 : vector<8x1024xf32>
    %24 = arith.mulf %21, %23 : vector<8x1024xf32>
    %25 = arith.addf %19, %24 : vector<8x1024xf32>
    %cst_9 = arith.constant 1.000000e+00 : f32
    %26 = vector.broadcast %cst_9 : f32 to vector<8x1024xf32>
    %27 = arith.subf %26, %25 : vector<8x1024xf32>
    %28 = arith.mulf %27, %27 : vector<8x1024xf32>
    %29 = arith.mulf %18, %28 : vector<8x1024xf32>
    %cst_10 = arith.constant 2.500000e-01 : f32
    %30 = vector.broadcast %cst_10 : f32 to vector<8x1024xf32>
    %31 = arith.mulf %30, %1 : vector<8x1024xf32>
    %cst_11 = arith.constant 1.000000e+00 : f32
    %32 = vector.broadcast %cst_11 : f32 to vector<8x1024xf32>
    %33 = arith.subf %32, %1 : vector<8x1024xf32>
    %cst_12 = arith.constant 7.500000e-01 : f32
    %34 = vector.broadcast %cst_12 : f32 to vector<8x1024xf32>
    %35 = arith.mulf %34, %33 : vector<8x1024xf32>
    %36 = arith.addf %31, %35 : vector<8x1024xf32>
    %37 = arith.mulf %36, %29 : vector<8x1024xf32>
    %c0_13 = arith.constant 0 : index
    %c0_14 = arith.constant 0 : index
    %38 = vector.load %arg3[%c0_13, %c0_14] : memref<8x1024xf32, #tpu.memory_space<vmem>>, vector<8x1024xf32>
    tpu.vector_store %arg3[%c0_13, %c0_14], %37 {strides = array<i32>} : memref<8x1024xf32, #tpu.memory_space<vmem>>, vector<8x1024xf32>,
    return
  }
  func.func @transform_0(%arg0: i32) -> (i32, i32) {
    %c0_i32 = arith.constant 0 : i32
    %c0_i32_0 = arith.constant 0 : i32
    return %arg0, %c0_i32 : i32, i32
  }
  func.func @transform_1(%arg0: i32) -> (i32, i32) {
    %c0_i32 = arith.constant 0 : i32
    %c0_i32_0 = arith.constant 0 : i32
    return %arg0, %c0_i32 : i32, i32
  }
  func.func @transform_2(%arg0: i32) -> (i32, i32) {
    %c0_i32 = arith.constant 0 : i32
    %c0_i32_0 = arith.constant 0 : i32
    return %arg0, %c0_i32 : i32, i32
  }
}

</mosaic_0001>

<bundles_post_ra>
// kernel: tpu_custom_call.1
= control target key start
LH: loop header
LB: loop body
LE: loop exit
PB: predicated region body
PF: predicated region fallthrough
CT: control target
= control target key end

     0   :  { %7 = vsyncpa [#allocation3], 0  ;;  %s720_s0 = inlined_call_operand.hbm [shape: f32[8,1024], index: 0, kind: input, shape index: {}]   ;;  %s721_s1 = inlined_call_operand.hbm [shape: f32[8,1024], index: 1, kind: input, shape index: {}]   ;;  %s722_s2 = inlined_call_operand.hbm [shape: f32[8,1024], index: 2, kind: output, shape index: {}]  }
   0x1   :  { %8 = vsyncpa [#allocation6], 0 }
   0x2   :  { %9 = vsyncpa [#allocation4], 0  ;;  %s471_s9 = smov [#allocation2]   ;;  %s472_s11 = smov [#allocation5]  }
   0x3   :  { %s16_s10 = sshll.u32 %s471_s9, 4  ;;  %s26_s12 = sshll.u32 %s472_s11, 4  ;;  %s17_s10 = int_to_ptr.vmem [resolvable:$true] %s16_s10  ;;  %s27_s12 = int_to_ptr.vmem [resolvable:$true] %s26_s12 }
   0x4   :  { %s399_s15 = scalar_lea.hbm %s720_s0, 1024 }
   0x5   :  { %p400_p0 = scmp.ne.s32.totalorder %s720_s0, %s399_s15  ;;  %p403_p1 = scmp.lt.u32.totalorder %s399_s15, %s720_s0 }
   0x7   :  { %p405_p2 = pnand %p403_p1, %p400_p0 }
   0x9   :  { %408 = shalt.err (!%p405_p2)
}
   0xa   :  { %s409_s20 = scalar_lea.vmem %s17_s10, 1024  ;;  %p414_p4 = scmp.lt.s32.totalorder %s17_s10, %s17_s10 }
   0xb   :  { %p410_p3 = scmp.ne.s32.totalorder %s17_s10, %s409_s20  ;;  %p415_p5 = scmp.lt.s32.totalorder %s409_s20, %s409_s20 }
   0xd   :  { %p416_p6 = por %p415_p5, %p414_p4 }
   0xf   :  { %p417_p7 = pnand %p416_p6, %p410_p3 }
  0x11   :  { %420 = shalt.err (!%p417_p7)
}
  0x12   :  { %19 = dma.hbm_to_vmem [thread:$0]  %s720_s0, 1024, %s17_s10, [#allocation3]  }
  0x13   :  { %s421_s25 = scalar_lea.hbm %s721_s1, 1024 }
  0x14   :  { %p422_p8 = scmp.ne.s32.totalorder %s721_s1, %s421_s25  ;;  %p425_p9 = scmp.lt.u32.totalorder %s421_s25, %s721_s1 }
  0x16   :  { %p427_p10 = pnand %p425_p9, %p422_p8 }
  0x18   :  { %430 = shalt.err (!%p427_p10)
}
  0x19   :  { %s431_s30 = scalar_lea.vmem %s27_s12, 1024  ;;  %p436_p12 = scmp.lt.s32.totalorder %s27_s12, %s27_s12 }
  0x1a   :  { %p432_p11 = scmp.ne.s32.totalorder %s27_s12, %s431_s30  ;;  %p437_p13 = scmp.lt.s32.totalorder %s431_s30, %s431_s30 }
  0x1c   :  { %p438_p0 = por %p437_p13, %p436_p12 }
  0x1e   :  { %p439_p1 = pnand %p438_p0, %p432_p11 }
  0x20   :  { %442 = shalt.err (!%p439_p1)
}
  0x21   :  { %29 = dma.hbm_to_vmem [thread:$0]  %s721_s1, 1024, %s27_s12, [#allocation6]  }
  0x22   :  { %465 = dma.done.wait [#allocation3], 1024  }
  0x23   :  { %466 = vsyncadd [#allocation3], 4294966272 }
  0x24   :  { %467 = dma.done.wait [#allocation6], 1024  }
  0x25   :  { %468 = vsyncadd [#allocation6], 4294966272  ;;  %v513_v0 = vld [vmem:[#allocation2] sm:$0xff]  ;;  %v515_v1 = vld [vmem:[#allocation2 + $0x8] sm:$0xff]  ;;  %s473_s1 = smov [#allocation7]  }
  0x26   :  { %v52_v2 = vand.u32 2147483647, %v513_v0  ;;  %v53_v3 = vand.u32 2147483647, %v515_v1  ;;  %v519_v4 = vld [vmem:[#allocation2 + $0x10] sm:$0xff]  ;;  %v522_v9 = vld [vmem:[#allocation2 + $0x18] sm:$0xff] }
  0x27   :  { %v54_v8 = vand.u32 2147483647, %v519_v4  ;;  %v524_v10 = vld [vmem:[#allocation5] sm:$0xff]  ;;  %v124_v12 = vmax.f32 %v513_v0, 0.0  ;;  %v529_v15 = vld [vmem:[#allocation5 + $0x8] sm:$0xff]  ;;  %v536_v21 = vld [vmem:[#allocation5 + $0x10] sm:$0xff] }
  0x28   :  { %v60_v5 = vsub.f32 0.0, %v52_v2  ;;  %v61_v6 = vsub.f32 0.0, %v53_v3  ;;  %v132_v13 = vmul.f32 %v524_v10, %v513_v0  ;;  %v55_v16 = vand.u32 2147483647, %v522_v9  ;;  %v532_v17 = vld [vmem:[#allocation2 + $0x20] sm:$0xff]  ;;  %v542_v26 = vld [vmem:[#allocation2 + $0x28] sm:$0xff] }
  0x29   :  { %v62_v14 = vsub.f32 0.0, %v54_v8  ;;  %v244_v19 = vsub.f32 1.0, %v524_v10  ;;  %v292_v20 = vmul.f32 0.25, %v524_v10  ;;  %v245_v24 = vsub.f32 1.0, %v529_v15  ;;  %v549_v30 = vld [vmem:[#allocation5 + $0x18] sm:$0xff]  ;;  %v577_v51 = vld [vmem:[#allocation5 + $0x20] sm:$0xff] }
  0x2a   :  { %v68_v7 = vmul.f32 1.442695, %v60_v5  ;;  %v70_v11 = vmul.f32 1.442695, %v61_v6  ;;  %v63_v22 = vsub.f32 0.0, %v55_v16  ;;  %v538_v23 = vsub.f32 %v124_v12, %v132_v13  ;;  %v591_v63 = vld [vmem:[#allocation2 + $0x30] sm:$0xff] }
  0x2b   :  { %v72_v18 = vmul.f32 1.442695, %v62_v14  ;;  %v56_v25 = vand.u32 2147483647, %v532_v17  ;;  %v300_v27 = vmul.f32 0.75, %v244_v19  ;;  %v125_v28 = vmax.f32 %v515_v1, 0.0 }
  0x2c   :  { %351 = vpow2.f32 %v68_v7  ;;  %v133_v29 = vmul.f32 %v529_v15, %v515_v1  ;;  %v74_v31 = vmul.f32 1.442695, %v63_v22  ;;  %v293_v32 = vmul.f32 0.25, %v529_v15  ;;  %s338_s4 = sshll.u32 %s473_s1, 4  ;;  %s339_s4 = int_to_ptr.vmem [resolvable:$true] %s338_s4 }
  0x2d   :  { %353 = vpow2.f32 %v70_v11  ;;  %v301_v33 = vmul.f32 0.75, %v245_v24  ;;  %v246_v34 = vsub.f32 1.0, %v536_v21  ;;  %v64_v35 = vsub.f32 0.0, %v56_v25  ;;  %s443_s5 = scalar_lea.vmem %s339_s4, 1024  ;;  %p448_p3 = scmp.lt.s32.totalorder %s339_s4, %s339_s4 }
  0x2e   :  { %355 = vpow2.f32 %v72_v18  ;;  %vm84_vm0 = vcmp.ge.f32.partialorder %v513_v0, 0.0  ;;  %v126_v36 = vmax.f32 %v519_v4, 0.0  ;;  %v134_v37 = vmul.f32 %v536_v21, %v519_v4  ;;  %p444_p2 = scmp.ne.s32.totalorder %s339_s4, %s443_s5  ;;  %p449_p4 = scmp.lt.s32.totalorder %s443_s5, %s443_s5 }
  0x2f   :  { %357 = vpow2.f32 %v74_v31  ;;  %v57_v38 = vand.u32 2147483647, %v542_v26  ;;  %v294_v39 = vmul.f32 0.25, %v536_v21  ;;  %v302_v40 = vmul.f32 0.75, %v246_v34 }
  0x30   :  { %v247_v41 = vsub.f32 1.0, %v549_v30  ;;  %v76_v42 = vmul.f32 1.442695, %v64_v35  ;;  %v564_v43 = vadd.f32 %v300_v27, %v292_v20  ;;  %vm85_vm1 = vcmp.ge.f32.partialorder %v515_v1, 0.0  ;;  %p450_p5 = por %p449_p4, %p448_p3 }
  0x31   :  { %v567_v44 = vsub.f32 %v125_v28, %v133_v29  ;;  %v127_v45 = vmax.f32 %v522_v9, 0.0  ;;  %v135_v46 = vmul.f32 %v549_v30, %v522_v9  ;;  %v572_v48 = vadd.f32 %v301_v33, %v293_v32 }
  0x32   :  { %v295_v49 = vmul.f32 0.25, %v549_v30  ;;  %v303_v50 = vmul.f32 0.75, %v247_v41  ;;  %359 = vpow2.f32 %v76_v42  ;;  %vm86_vm2 = vcmp.ge.f32.partialorder %v519_v4, 0.0  ;;  %p451_p6 = pnand %p450_p5, %p444_p2 }
  0x33   :  { %v128_v54 = vmax.f32 %v532_v17, 0.0  ;;  %v136_v55 = vmul.f32 %v577_v51, %v532_v17  ;;  %v65_v56 = vsub.f32 0.0, %v57_v38  ;;  %v583_v58 = vsub.f32 %v126_v36, %v134_v37 }
  0x34   :  { %v585_v59 = vadd.f32 %v302_v40, %v294_v39  ;;  %vm87_vm3 = vcmp.ge.f32.partialorder %v522_v9, 0.0  ;;  %v588_v61 = vsub.f32 %v127_v45, %v135_v46  ;;  %v248_v62 = vsub.f32 1.0, %v577_v51 }
  0x35   :  { %v593_v5 = vadd.f32 %v303_v50, %v295_v49  ;;  %v596_v6 = vmul.f32 0.25, %v577_v51  ;;  %v598_v8 = vsub.f32 %v128_v54, %v136_v55  ;;  %v78_v11 = vmul.f32 1.442695, %v65_v56 }
  0x36   :  { %v352_v47 = vpop.eup %351  ;;  %vm88_vm4 = vcmp.ge.f32.partialorder %v532_v17, 0.0  ;;  %v58_v14 = vand.u32 2147483647, %v591_v63  ;;  %v604_v22 = vmul.f32 0.75, %v248_v62  ;;  %v129_v28 = vmax.f32 %v542_v26, 0.0 }
  0x37   :  { %v354_v52 = vpop.eup %353  ;;  %v100_v53 = vadd.f32 1.0, %v352_v47  ;;  %v151_v60 = vmul.f32 -0.5, %v352_v47  ;;  %v154_v12 = vand.u32 2147483647, %v352_v47  ;;  %v92_v25 = vsel %vm84_vm0, 1.0, %v352_v47 }
  0x38   :  { %v101_v57 = vadd.f32 1.0, %v354_v52  ;;  %v356_v2 = vpop.eup %355  ;;  %v160_v3 = vmul.f32 -0.5, %v354_v52  ;;  %v163_v20 = vand.u32 2147483647, %v354_v52  ;;  %v93_v36 = vsel %vm85_vm1, 1.0, %v354_v52 }
  0x39   :  { %361 = vrcp.f32 %v100_v53  ;;  %v102_v7 = vadd.f32 1.0, %v356_v2  ;;  %v169_v13 = vmul.f32 -0.5, %v356_v2  ;;  %v358_v16 = vpop.eup %357  ;;  %v152_v18 = vadd.f32 1.0, %v151_v60 }
  0x3a   :  { %363 = vlog2.f32 %v100_v53  ;;  %v161_v27 = vadd.f32 1.0, %v160_v3  ;;  %v172_v29 = vand.u32 2147483647, %v356_v2  ;;  %v103_v31 = vadd.f32 1.0, %v358_v16 }
  0x3b   :  { %365 = vrcp.f32 %v101_v57  ;;  %v178_v32 = vmul.f32 -0.5, %v358_v16  ;;  %vm609_vm5 = vcmp.lt.f32.partialorder %v154_v12, 0.0004427343  ;;  %v170_v37 = vadd.f32 1.0, %v169_v13 }
  0x3c   :  { %367 = vlog2.f32 %v101_v57  ;;  %v360_v33 = vpop.eup %359  ;;  %v66_v38 = vsub.f32 0.0, %v58_v14  ;;  %v153_v0 = vmul.f32 %v352_v47, %v152_v18  ;;  %vm615_vm6 = vcmp.lt.f32.partialorder %v163_v20, 0.0004427343 }
  0x3d   :  { %369 = vrcp.f32 %v102_v7  ;;  %v181_v40 = vand.u32 2147483647, %v358_v16  ;;  %v94_v42 = vsel %vm86_vm2, 1.0, %v356_v2  ;;  %v104_v45 = vadd.f32 1.0, %v360_v33 }
  0x3e   :  { %371 = vlog2.f32 %v102_v7  ;;  %v187_v46 = vmul.f32 -0.5, %v360_v33  ;;  %v162_v50 = vmul.f32 %v354_v52, %v161_v27  ;;  %vm621_vm7 = vcmp.lt.f32.partialorder %v172_v29, 0.0004427343 }
  0x3f   :  { %373 = vpow2.f32 %v78_v11  ;;  %v95_v47 = vsel %vm87_vm3, 1.0, %v358_v16  ;;  %v179_v53 = vadd.f32 1.0, %v178_v32  ;;  %v171_v56 = vmul.f32 %v356_v2, %v170_v37 }
  0x40   :  { %375 = vrcp.f32 %v103_v31  ;;  %v80_v57 = vmul.f32 1.442695, %v66_v38  ;;  %vm627_vm8 = vcmp.lt.f32.partialorder %v181_v40, 0.0004427343  ;;  %v190_v52 = vand.u32 2147483647, %v360_v33 }
  0x41   :  { %377 = vlog2.f32 %v103_v31  ;;  %v188_v13 = vadd.f32 1.0, %v187_v46  ;;  %v180_v20 = vmul.f32 %v358_v16, %v179_v53  ;;  %vm89_vm10 = vcmp.ge.f32.partialorder %v542_v26, 0.0 }
  0x42   :  { %379 = vrcp.f32 %v104_v45  ;;  %vm643_vm9 = vcmp.lt.f32.partialorder %v190_v52, 0.0004427343  ;;  %vm90_vm12 = vcmp.ge.f32.partialorder %v591_v63, 0.0 }
  0x43   :  { %v362_v49 = vpop.eup %361  ;;  %381 = vlog2.f32 %v104_v45 }
  0x44   :  { %v364_v54 = vpop.eup %363  ;;  %v109_v55 = vmul.f32 %v362_v49, %v92_v25  ;;  %v96_v25 = vsel %vm88_vm4, 1.0, %v360_v33  ;;  %383 = vpow2.f32 %v80_v57 }
  0x45   :  { %v366_v4 = vpop.eup %365  ;;  %v150_v60 = vmul.f32 0.6931472, %v364_v54 }
  0x46   :  { %v368_v7 = vpop.eup %367  ;;  %v228_v11 = vmul.f32 %v109_v55, %v524_v10  ;;  %v236_v12 = vsub.f32 1.0, %v109_v55  ;;  %v111_v9 = vmul.f32 %v366_v4, %v93_v36 }
  0x47   :  { %v370_v14 = vpop.eup %369  ;;  %v156_v2 = vsel %vm609_vm5, %v153_v0, %v150_v60  ;;  %v159_v18 = vmul.f32 0.6931472, %v368_v7 }
  0x48   :  { %v372_v27 = vpop.eup %371  ;;  %v252_v29 = vmul.f32 %v244_v19, %v236_v12  ;;  %v229_v31 = vmul.f32 %v111_v9, %v529_v15  ;;  %v237_v32 = vsub.f32 1.0, %v111_v9  ;;  %v113_v35 = vmul.f32 %v370_v14, %v94_v42 }
  0x49   :  { %v639_v37 = vpop.eup %373  ;;  %v165_v36 = vsel %vm615_vm6, %v162_v50, %v159_v18  ;;  %v168_v38 = vmul.f32 0.6931472, %v372_v27  ;;  %v220_v17 = vadd.f32 %v156_v2, %v538_v23  ;;  %v189_v19 = vmul.f32 %v360_v33, %v188_v13  ;;  %v49_v2 = vld [vmem:[#allocation5 + $0x28] sm:$0xff] }
  0x4a   :  { %v260_v0 = vadd.f32 %v252_v29, %v228_v11  ;;  %v253_v10 = vmul.f32 %v245_v24, %v237_v32  ;;  %v376_v40 = vpop.eup %375  ;;  %v230_v42 = vmul.f32 %v113_v35, %v536_v21  ;;  %v238_v45 = vsub.f32 1.0, %v113_v35 }
  0x4b   :  { %v174_v39 = vsel %vm621_vm7, %v171_v56, %v168_v38  ;;  %v105_v46 = vadd.f32 1.0, %v639_v37  ;;  %v378_v49 = vpop.eup %377  ;;  %v221_v23 = vadd.f32 %v165_v36, %v567_v44  ;;  %v115_v54 = vmul.f32 %v376_v40, %v95_v47 }
  0x4c   :  { %v268_v50 = vsub.f32 1.0, %v260_v0  ;;  %v261_v53 = vadd.f32 %v253_v10, %v229_v31  ;;  %v222_v15 = vadd.f32 %v174_v39, %v583_v58  ;;  %v254_v24 = vmul.f32 %v246_v34, %v238_v45  ;;  %v380_v1 = vpop.eup %379  ;;  %v665_v58 = vld [vmem:[#allocation2 + $0x38] sm:$0xff] }
  0x4d   :  { %v177_v33 = vmul.f32 0.6931472, %v378_v49  ;;  %385 = vrcp.f32 %v105_v46  ;;  %v231_v57 = vmul.f32 %v115_v54, %v549_v30  ;;  %v239_v4 = vsub.f32 1.0, %v115_v54  ;;  %v382_v60 = vpop.eup %381 }
  0x4e   :  { %v276_v55 = vmul.f32 %v268_v50, %v268_v50  ;;  %v269_v56 = vsub.f32 1.0, %v261_v53  ;;  %v262_v52 = vadd.f32 %v254_v24, %v230_v42  ;;  %v117_v7 = vmul.f32 %v380_v1, %v96_v25  ;;  %v668_v18 = vpop.eup %383 }
  0x4f   :  { %387 = vlog2.f32 %v105_v46  ;;  %v196_v44 = vmul.f32 -0.5, %v639_v37  ;;  %v183_v21 = vsel %vm627_vm8, %v180_v20, %v177_v33  ;;  %v255_v34 = vmul.f32 %v247_v41, %v239_v4 }
  0x50   :  { %v284_v47 = vmul.f32 %v276_v55, %v220_v17  ;;  %v277_v11 = vmul.f32 %v269_v56, %v269_v56  ;;  %v270_v12 = vsub.f32 1.0, %v262_v52  ;;  %v186_v9 = vmul.f32 0.6931472, %v382_v60  ;;  %v50_v52 = vld [vmem:[#allocation5 + $0x30] sm:$0xff] }
  0x51   :  { %v232_v13 = vmul.f32 %v117_v7, %v577_v51  ;;  %v240_v14 = vsub.f32 1.0, %v117_v7  ;;  %v263_v29 = vadd.f32 %v255_v34, %v231_v57  ;;  %v137_v3 = vmul.f32 %v49_v2, %v542_v26 }
  0x52   :  { %v316_v25 = vmul.f32 %v564_v43, %v284_v47  ;;  %v285_v27 = vmul.f32 %v277_v11, %v221_v23  ;;  %v278_v20 = vmul.f32 %v270_v12, %v270_v12  ;;  %v223_v30 = vadd.f32 %v183_v21, %v588_v61 }
  0x53   :  { %v256_v41 = vmul.f32 %v248_v62, %v240_v14  ;;  %v59_v31 = vand.u32 2147483647, %v665_v58  ;;  %v271_v36 = vsub.f32 1.0, %v263_v29  ;;  %v192_v35 = vsel %vm643_vm9, %v189_v19, %v186_v9 }
  0x54   :  { %324 = vst [vmem:[#allocation7] sm:$0xff] %v316_v25  ;;  %v317_v32 = vmul.f32 %v572_v48, %v285_v27  ;;  %v197_v43 = vadd.f32 1.0, %v196_v44  ;;  %v286_v38 = vmul.f32 %v278_v20, %v222_v15  ;;  %v97_v0 = vsel %vm89_vm10, 1.0, %v639_v37 }
  0x55   :  { %v264_v17 = vadd.f32 %v256_v41, %v232_v13  ;;  %v199_v61 = vand.u32 2147483647, %v639_v37  ;;  %v279_v51 = vmul.f32 %v271_v36, %v271_v36  ;;  %v312_v62 = vadd.f32 %v604_v22, %v596_v6 }
  0x56   :  { %325 = vst [vmem:[#allocation7 + $0x8] sm:$0xff] %v317_v32  ;;  %v249_v10 = vsub.f32 1.0, %v49_v2  ;;  %v106_v48 = vadd.f32 1.0, %v668_v18  ;;  %v318_v16 = vmul.f32 %v585_v59, %v286_v38  ;;  %v224_v19 = vadd.f32 %v192_v35, %v598_v8 }
  0x57   :  { %v386_v40 = vpop.eup %385  ;;  %v272_v39 = vsub.f32 1.0, %v264_v17  ;;  %v67_v42 = vsub.f32 0.0, %v59_v31  ;;  %v287_v45 = vmul.f32 %v279_v51, %v223_v30  ;;  %v198_v49 = vmul.f32 %v639_v37, %v197_v43  ;;  %v51_v51 = vld [vmem:[#allocation5 + $0x38] sm:$0xff] }
  0x58   :  { %v119_v46 = vmul.f32 %v386_v40, %v97_v0  ;;  %389 = vrcp.f32 %v106_v48  ;;  %326 = vst [vmem:[#allocation7 + $0x10] sm:$0xff] %v318_v16  ;;  %vm689_vm11 = vcmp.lt.f32.partialorder %v199_v61, 0.0004427343  ;;  %v145_v37 = vsub.f32 %v129_v28, %v137_v3 }
  0x59   :  { %v388_v50 = vpop.eup %387  ;;  %v280_v23 = vmul.f32 %v272_v39, %v272_v39  ;;  %391 = vlog2.f32 %v106_v48  ;;  %v82_v22 = vmul.f32 1.442695, %v67_v42  ;;  %v319_v59 = vmul.f32 %v593_v5, %v287_v45 }
  0x5a   :  { %v195_v53 = vmul.f32 0.6931472, %v388_v50  ;;  %v233_v8 = vmul.f32 %v119_v46, %v49_v2  ;;  %v241_v54 = vsub.f32 1.0, %v119_v46  ;;  %v205_v33 = vmul.f32 -0.5, %v668_v18 }
  0x5b   :  { %v288_v15 = vmul.f32 %v280_v23, %v224_v19  ;;  %393 = vpow2.f32 %v82_v22  ;;  %327 = vst [vmem:[#allocation7 + $0x18] sm:$0xff] %v319_v59  ;;  %v297_v5 = vmul.f32 0.25, %v49_v2  ;;  %v305_v57 = vmul.f32 0.75, %v249_v10 }
  0x5c   :  { %v257_v24 = vmul.f32 %v249_v10, %v241_v54  ;;  %v201_v55 = vsel %vm689_vm11, %v198_v49, %v195_v53  ;;  %v98_v7 = vsel %vm90_vm12, 1.0, %v668_v18  ;;  %v206_v26 = vadd.f32 1.0, %v205_v33 }
  0x5d   :  { %v320_v1 = vmul.f32 %v312_v62, %v288_v15  ;;  %v225_v4 = vadd.f32 %v201_v55, %v145_v37  ;;  %v208_v28 = vand.u32 2147483647, %v668_v18  ;;  %v313_v11 = vadd.f32 %v305_v57, %v297_v5 }
  0x5e   :  { %v265_v56 = vadd.f32 %v257_v24, %v233_v8  ;;  %v130_v12 = vmax.f32 %v591_v63, 0.0  ;;  %v138_v9 = vmul.f32 %v50_v52, %v591_v63  ;;  %v250_v13 = vsub.f32 1.0, %v50_v52 }
  0x5f   :  { %328 = vst [vmem:[#allocation7 + $0x20] sm:$0xff] %v320_v1  ;;  %v207_v25 = vmul.f32 %v668_v18, %v206_v26  ;;  %vm209_vm13 = vcmp.lt.f32.partialorder %v208_v28, 0.0004427343  ;;  %v298_v35 = vmul.f32 0.25, %v50_v52  ;;  %vm91_vm14 = vcmp.ge.f32.partialorder %v665_v58, 0.0 }
  0x60   :  { %v273_v60 = vsub.f32 1.0, %v265_v56  ;;  %v146_v41 = vsub.f32 %v130_v12, %v138_v9  ;;  %v306_v43 = vmul.f32 0.75, %v250_v13  ;;  %v131_v42 = vmax.f32 %v665_v58, 0.0 }
  0x61   :  { %v139_v45 = vmul.f32 %v51_v51, %v665_v58  ;;  %v251_v46 = vsub.f32 1.0, %v51_v51  ;;  %v299_v54 = vmul.f32 0.25, %v51_v51 }
  0x62   :  { %v390_v44 = vpop.eup %389  ;;  %v281_v47 = vmul.f32 %v273_v60, %v273_v60  ;;  %v314_v18 = vadd.f32 %v306_v43, %v298_v35 }
  0x63   :  { %v392_v21 = vpop.eup %391  ;;  %v121_v34 = vmul.f32 %v390_v44, %v98_v7  ;;  %v147_v22 = vsub.f32 %v131_v42, %v139_v45  ;;  %v307_v15 = vmul.f32 0.75, %v251_v46 }
  0x64   :  { %v289_v14 = vmul.f32 %v281_v47, %v225_v4  ;;  %v204_v2 = vmul.f32 0.6931472, %v392_v21 }
  0x65   :  { %v394_v27 = vpop.eup %393  ;;  %v234_v29 = vmul.f32 %v121_v34, %v50_v52  ;;  %v242_v3 = vsub.f32 1.0, %v121_v34  ;;  %v315_v1 = vadd.f32 %v307_v15, %v299_v54 }
  0x66   :  { %v321_v20 = vmul.f32 %v313_v11, %v289_v14  ;;  %v107_v30 = vadd.f32 1.0, %v394_v27  ;;  %v210_v32 = vsel %vm209_vm13, %v207_v25, %v204_v2  ;;  %v214_v17 = vmul.f32 -0.5, %v394_v27 }
  0x67   :  { %v258_v31 = vmul.f32 %v250_v13, %v242_v3  ;;  %v226_v63 = vadd.f32 %v210_v32, %v146_v41  ;;  %v99_v62 = vsel %vm91_vm14, 1.0, %v394_v27  ;;  %v217_v40 = vand.u32 2147483647, %v394_v27 }
  0x68   :  { %329 = vst [vmem:[#allocation7 + $0x28] sm:$0xff] %v321_v20  ;;  %395 = vrcp.f32 %v107_v30  ;;  %v215_v10 = vadd.f32 1.0, %v214_v17 }
  0x69   :  { %v266_v36 = vadd.f32 %v258_v31, %v234_v29  ;;  %397 = vlog2.f32 %v107_v30  ;;  %vm218_vm15 = vcmp.lt.f32.partialorder %v217_v40, 0.0004427343 }
  0x6a   :  { %v216_v50 = vmul.f32 %v394_v27, %v215_v10 }
  0x6b   :  { %v274_v38 = vsub.f32 1.0, %v266_v36 }
  0x6d   :  { %v282_v0 = vmul.f32 %v274_v38, %v274_v38 }
  0x6f   :  { %v290_v61 = vmul.f32 %v282_v0, %v226_v63 }
  0x71   :  { %v322_v48 = vmul.f32 %v314_v18, %v290_v61 }
  0x72   :  { %v396_v16 = vpop.eup %395 }
  0x73   :  { %v398_v19 = vpop.eup %397  ;;  %330 = vst [vmem:[#allocation7 + $0x30] sm:$0xff] %v322_v48  ;;  %v123_v39 = vmul.f32 %v396_v16, %v99_v62 }
  0x74   :  { %v213_v49 = vmul.f32 0.6931472, %v398_v19 }
  0x75   :  { %v235_v23 = vmul.f32 %v123_v39, %v51_v51  ;;  %v243_v6 = vsub.f32 1.0, %v123_v39 }
  0x76   :  { %v219_v53 = vsel %vm218_vm15, %v216_v50, %v213_v49 }
  0x77   :  { %v259_v59 = vmul.f32 %v251_v46, %v243_v6  ;;  %v227_v37 = vadd.f32 %v219_v53, %v147_v22 }
  0x79   :  { %v267_v8 = vadd.f32 %v259_v59, %v235_v23 }
  0x7b   :  { %v275_v24 = vsub.f32 1.0, %v267_v8 }
  0x7d   :  { %v283_v33 = vmul.f32 %v275_v24, %v275_v24 }
  0x7f   :  { %v291_v55 = vmul.f32 %v283_v33, %v227_v37 }
  0x81   :  { %v323_v58 = vmul.f32 %v315_v1, %v291_v55 }
  0x83   :  { %331 = vst [vmem:[#allocation7 + $0x38] sm:$0xff] %v323_v58 }
  0x84   :  { %454 = shalt.err (!%p451_p6)
}
  0x85   :  { %s455_s8 = scalar_lea.hbm %s722_s2, 1024 }
  0x86   :  { %p456_p7 = scmp.ne.s32.totalorder %s722_s2, %s455_s8  ;;  %p459_p8 = scmp.lt.u32.totalorder %s455_s8, %s722_s2 }
  0x88   :  { %p461_p9 = pnand %p459_p8, %p456_p7 }
  0x8a   :  { %464 = shalt.err (!%p461_p9)
}
  0x8b   :  { %341 = dma.vmem_to_hbm [thread:$0]  %s339_s4, 1024, %s722_s2, [#allocation4]  }
  0x8c   :  { %469 = dma.done.wait [#allocation4], 1024  }
  0x8d   :  { %470 = vsyncadd [#allocation4], 4294966272 }
  0x8e   :  { %345 = vsyncpa [#allocation3], 1 }
  0x8f   :  { %346 = vsyncpa [#allocation6], 1 }
  0x90   :  { %347 = vsyncpa [#allocation4], 1 }

</bundles_post_ra>
